<compile_context>
chip_gen: v6e
topology: v6e:2x2x1
jax: 0.10.0
libtpu: 0.0.40
codegen_flags: <defaults>
</compile_context>

<pallas_src>
import functools

import numpy as np
import jax
import jax.numpy as jnp
from jax.experimental import pallas as pl
from jax.experimental.pallas import tpu as pltpu


_VMEM_LIMIT = 48 * 1024 * 1024  # <= v7x 64 MiB physical; >> 16/32 MiB scoped defaults


# ----------------------------- small helpers ---------------------------------------

def _round_up(n, m):
    return ((n + m - 1) // m) * m


def _pad_axis(x, axis, target):
    pad = target - x.shape[axis]
    if pad <= 0:
        return x
    widths = [(0, 0)] * x.ndim
    widths[axis] = (0, pad)
    return jnp.pad(x, widths)


def _pad_gates(w, h, hp):
    """Pad a [..., 4*h] LSTM gate axis to [..., 4*hp], padding each gate block separately."""
    lead = w.shape[:-1]
    w4 = w.reshape(*lead, 4, h)
    widths = [(0, 0)] * (w4.ndim - 1) + [(0, hp - h)]
    w4 = jnp.pad(w4, widths)
    return w4.reshape(*lead, 4 * hp)


def _invariant_spec(block_shape, index_map):
    """BlockSpec for a grid-invariant operand: single-buffer it (no pointless
    double-buffering).  Falls back to a plain BlockSpec if pipeline_mode/Buffered
    is unavailable in this JAX version."""
    try:
        return pl.BlockSpec(block_shape, index_map, pipeline_mode=pl.Buffered(1))
    except Exception:  # pragma: no cover - older JAX without pipeline_mode
        return pl.BlockSpec(block_shape, index_map)


# ----------------------------- Linear (tiled matmul + bias, bf16 MXU) ---------------

def _linear_kernel(x_ref, w_ref, b_ref, o_ref):
    o_ref[...] = (
        jnp.dot(x_ref[...], w_ref[...], preferred_element_type=jnp.float32)
        + b_ref[...]
    ).astype(o_ref.dtype)


def linear(x, w, b, *, out_dtype=jnp.float32, tile_m=256, tile_n=1024):
    """x: [M, K], w: [K, N], b: [1, N] -> [M, N] out_dtype.

    Operands are cast to bf16 (bf16-native MXU on v5e/v6e/v7x), accumulation in f32.
    M is padded up to a 256-row tile and N up to a lane-dense tile (never degrades to
    8-row or full-array tiles); padding rows/cols are zero and sliced off the result.
    """
    M, K = x.shape
    N = w.shape[1]
    x = x.astype(jnp.bfloat16)
    w = w.astype(jnp.bfloat16)
    b = b.astype(jnp.float32)

    tm = tile_m if M >= tile_m else _round_up(M, 8)
    tn = tile_n if N >= tile_n else _round_up(N, 128)
    Mp = _round_up(M, tm)
    Np = _round_up(N, tn)
    x = _pad_axis(x, 0, Mp)
    w = _pad_axis(w, 1, Np)
    b = _pad_axis(b, 1, Np)
    gm, gn = Mp // tm, Np // tn

    # When the grid only iterates M, the weight/bias tiles are grid-invariant.
    if gn == 1:
        w_spec = _invariant_spec((K, tn), lambda i, j: (0, j))
        b_spec = _invariant_spec((1, tn), lambda i, j: (0, j))
    else:
        w_spec = pl.BlockSpec((K, tn), lambda i, j: (0, j))
        b_spec = pl.BlockSpec((1, tn), lambda i, j: (0, j))

    out = pl.pallas_call(
        _linear_kernel,
        out_shape=jax.ShapeDtypeStruct((Mp, Np), out_dtype),
        grid=(gm, gn),
        in_specs=[pl.BlockSpec((tm, K), lambda i, j: (i, 0)), w_spec, b_spec],
        out_specs=pl.BlockSpec((tm, tn), lambda i, j: (i, j)),
        compiler_params=pltpu.CompilerParams(
            dimension_semantics=("parallel", "parallel"),
            vmem_limit_bytes=_VMEM_LIMIT),
    )(x, w, b)
    if (Mp, Np) != (M, N):
        out = out[:M, :N]
    return out


# ----------------------------- cnn_embedding (tiled GAP + fused matmuls) ------------
# Stand-in backbone: pointwise conv -> GAP -> fc.  Linear in channels, so the global
# average pool commutes to the front.  The pool is pure HBM-bandwidth work: tile over
# batch (parallel) and over HW (arbitrary), accumulating partial sums in VMEM scratch;
# the two tiny matmuls run on the last HW chunk.

def _cnn_embed_kernel(x_ref, wc_ref, bc_ref, wf_ref, bf_ref, o_ref, pooled_sc, *, inv_hw):
    s = pl.program_id(1)

    @pl.when(s == 0)
    def _init():
        pooled_sc[...] = jnp.zeros_like(pooled_sc)

    pooled_sc[...] += jnp.sum(x_ref[...], axis=2)                        # [bB, C]

    @pl.when(s == pl.num_programs(1) - 1)
    def _finalize():
        pooled = pooled_sc[...] * inv_hw                                 # true-HW mean
        feat = (jnp.dot(pooled, wc_ref[...], preferred_element_type=jnp.float32)
                + bc_ref[...])                                           # [bB, Fp]
        o_ref[...] = (jnp.dot(feat, wf_ref[...], preferred_element_type=jnp.float32)
                      + bf_ref[...]).astype(o_ref.dtype)                 # [bB, Ep]


def cnn_embedding(imgs_bchw, w_conv, b_conv, w_fc, b_fc):
    B, C, H, W = imgs_bchw.shape
    HW = H * W
    x = imgs_bchw.reshape(B, C, HW)
    Fp = w_conv.shape[1]
    Ep = w_fc.shape[1]

    # spatial tile: lane-dense multiple of 128; zero-pad HW (zeros don't perturb the sum,
    # and the mean divides by the true HW).
    tHW = min(_round_up(HW, 128), 2048)
    HWp = _round_up(HW, tHW)
    x = _pad_axis(x, 2, HWp)

    # batch tile
    bB = B
    for cand in (32, 16, 8):
        if B % cand == 0:
            bB = cand
            break

    kernel = functools.partial(_cnn_embed_kernel, inv_hw=1.0 / float(HW))
    return pl.pallas_call(
        kernel,
        out_shape=jax.ShapeDtypeStruct((B, Ep), jnp.float32),
        grid=(B // bB, HWp // tHW),
        in_specs=[
            pl.BlockSpec((bB, C, tHW), lambda i, s: (i, 0, s)),
            _invariant_spec((C, Fp), lambda i, s: (0, 0)),
            _invariant_spec((1, Fp), lambda i, s: (0, 0)),
            _invariant_spec((Fp, Ep), lambda i, s: (0, 0)),
            _invariant_spec((1, Ep), lambda i, s: (0, 0)),
        ],
        out_specs=pl.BlockSpec((bB, Ep), lambda i, s: (i, 0)),
        scratch_shapes=[pltpu.VMEM((bB, C), jnp.float32)],
        compiler_params=pltpu.CompilerParams(
            dimension_semantics=("parallel", "arbitrary"),
            vmem_limit_bytes=_VMEM_LIMIT),
    )(x, w_conv, b_conv, w_fc, b_fc)


# ----------------------------- LSTM recurrence (time-tiled, x-proj hoisted) ---------

def _lstm_kernel(xp_ref, whh_ref, out_ref, h_sc, c_sc):
    # xp:  [tT, bb, 4Hp] bf16 (x @ W_ih + b, precomputed outside the recurrence)
    # whh: [Hp, 4Hp] bf16 (grid-invariant, single-buffered)
    # out: [tT, bb, Hp] bf16
    # h/c: [bb, Hp] f32 VMEM scratch persisting across the time ("arbitrary") grid axis.
    tT = xp_ref.shape[0]
    Hp = h_sc.shape[1]

    @pl.when(pl.program_id(1) == 0)
    def _init():
        h_sc[...] = jnp.zeros_like(h_sc)
        c_sc[...] = jnp.zeros_like(c_sc)

    whh = whh_ref[...]
    for t in range(tT):  # tT <= 8: short static unroll per grid invocation
        gates = xp_ref[t].astype(jnp.float32) + jnp.dot(
            h_sc[...].astype(jnp.bfloat16), whh,
            preferred_element_type=jnp.float32)
        # PyTorch gate order: i, f, g, o — each slice is 128-lane aligned (Hp % 128 == 0).
        i_g = jax.nn.sigmoid(gates[:, 0 * Hp:1 * Hp])
        f_g = jax.nn.sigmoid(gates[:, 1 * Hp:2 * Hp])
        g_g = jnp.tanh(gates[:, 2 * Hp:3 * Hp])
        o_g = jax.nn.sigmoid(gates[:, 3 * Hp:4 * Hp])
        c_new = f_g * c_sc[...] + i_g * g_g
        h_new = o_g * jnp.tanh(c_new)
        c_sc[...] = c_new
        h_sc[...] = h_new
        out_ref[t] = h_new.astype(out_ref.dtype)


def lstm_forward(xp_tbg, w_hh, Hp, *, time_tile=8):
    """xp_tbg: [T, B, 4Hp] (bf16), w_hh: [Hp, 4Hp] -> hidden states [Tp, B, Hp] bf16."""
    T, B, G = xp_tbg.shape
    w_hh = w_hh.astype(jnp.bfloat16)

    # Batch block: split across v7x's two TensorCores only when each half still keeps the
    # 256-row MXU busy (bb >= 128); otherwise keep the full batch per block (v5e/v6e).
    bb = B // 2 if (B >= 256 and (B // 2) % 8 == 0) else B

    # Time chunking: zero-padded trailing timesteps only produce outputs we never gather.
    tT = min(time_tile, T)
    Tp = _round_up(T, tT)
    xp_tbg = _pad_axis(xp_tbg, 0, Tp)

    return pl.pallas_call(
        _lstm_kernel,
        out_shape=jax.ShapeDtypeStruct((Tp, B, Hp), jnp.bfloat16),
        grid=(B // bb, Tp // tT),
        in_specs=[
            pl.BlockSpec((tT, bb, G), lambda i, s: (s, i, 0)),
            _invariant_spec((Hp, G), lambda i, s: (0, 0)),
        ],
        out_specs=pl.BlockSpec((tT, bb, Hp), lambda i, s: (s, i, 0)),
        scratch_shapes=[
            pltpu.VMEM((bb, Hp), jnp.float32),   # h carry
            pltpu.VMEM((bb, Hp), jnp.float32),   # c carry
        ],
        compiler_params=pltpu.CompilerParams(
            dimension_semantics=("parallel", "arbitrary"),
            vmem_limit_bytes=_VMEM_LIMIT),
    )(xp_tbg, w_hh)


# ----------------------------- Show_and_tell forward_train -------------------------

def forward_train(params, imgs, captions, lengths):
    """
    imgs:     [B, 3, H, W] float32 (NCHW, like PyTorch)
    captions: [B, seq_len] int32
    lengths:  python list of ints, sorted descending, each <= 1 + seq_len
    returns:  [sum(lengths), vocab] float32  (decode applied to packed LSTM outputs)
    """
    B = imgs.shape[0]
    F = params["w_conv"].shape[1]
    E = params["w_fc"].shape[1]
    Hdim = params["w_hh"].shape[0]
    V = params["w_dec"].shape[1]

    LANE = 128
    Fp = _round_up(F, LANE)
    Ep = _round_up(E, LANE)
    Hp = _round_up(Hdim, LANE)
    Vp = _round_up(V, LANE)

    # --- zero-pad params so every last dim / gate block is lane-dense (exact on valid lanes;
    #     see the zero-padding invariant note at the top of the file) ---
    w_conv = _pad_axis(params["w_conv"], 1, Fp)
    b_conv = _pad_axis(params["b_conv"], 1, Fp)
    w_fc = _pad_axis(_pad_axis(params["w_fc"], 0, Fp), 1, Ep)
    b_fc = _pad_axis(params["b_fc"], 1, Ep)
    emb = _pad_axis(params["emb"], 1, Ep)
    w_ih = _pad_axis(_pad_gates(params["w_ih"], Hdim, Hp), 0, Ep)
    w_hh = _pad_axis(_pad_gates(params["w_hh"], Hdim, Hp), 0, Hp)
    b_lstm = _pad_gates(params["b_lstm"], Hdim, Hp)   # b_lstm = b_ih + b_hh (PyTorch LSTM)
    w_dec = _pad_axis(_pad_axis(params["w_dec"], 0, Hp), 1, Vp)
    b_dec = _pad_axis(params["b_dec"], 1, Vp)

    # --- cnn_embedding: tiled GAP (batch parallel x HW arbitrary) + fused matmuls ---
    img_feats = cnn_embedding(imgs, w_conv, b_conv, w_fc, b_fc)            # [B, Ep] f32

    # --- word embedding gather (glue) ---
    word_feats = emb[captions]                                             # [B, S, Ep]

    # --- concat image feature as first timestep ---
    inputs = jnp.concatenate([img_feats[:, None, :], word_feats], axis=1)  # [B, T, Ep]
    x_tbe = jnp.transpose(inputs, (1, 0, 2))                               # [T, B, Ep]
    T = x_tbe.shape[0]

    # --- hoist LSTM input projection out of the recurrence: one big bf16 tiled matmul,
    #     emitted in bf16 (halves the dominant LSTM input stream) ---
    xp = linear(x_tbe.reshape(T * B, Ep), w_ih, b_lstm,
                out_dtype=jnp.bfloat16).reshape(T, B, 4 * Hp)              # [T, B, 4Hp]

    # --- serial LSTM recurrence: only h @ W_hh inside the loop (dropout=0.3 is a no-op
    #     for num_layers=1) ---
    hs = lstm_forward(xp, w_hh, Hp)                                        # [Tp, B, Hp] bf16

    # --- pack_padded_sequence(batch_first=True) data ordering: time-major over valid rows ---
    order = [(t, b) for t in range(max(lengths))
             for b in range(len(lengths)) if lengths[b] > t]
    flat_idx = jnp.asarray(np.array([t * B + b for t, b in order], dtype=np.int32))
    # TODO(synk): fuse this gather into the decode kernel via
    #             PrefetchScalarGridSpec(num_scalar_prefetch=1) + pl.Element row index_map
    #             to avoid materializing the [P, Hp] intermediate in HBM.
    packed_h = hs.reshape(-1, Hp)[flat_idx]                                # [P, Hp] bf16

    # --- decode linear (bf16 MXU, f32 accumulate), slice padding off ---
    logits = linear(packed_h, w_dec, b_dec)                                # [P, Vp] f32
    return logits[:, :V]


# ----------------------------- main -------------------------------------------------

if __name__ == "__main__":
    key = jax.random.PRNGKey(0)
    B, C, Himg, Wimg = 2, 3, 16, 16
    F = 64          # stand-in for resnet34 fc.in_features (512 in the full model)
    E = 32          # embed_size
    Hdim = 32       # hidden_units
    V = 64          # vocab_size
    seq_len = 6
    lengths = [7, 5]  # sorted descending, each <= 1 + seq_len

    ks = jax.random.split(key, 10)
    imgs = jax.random.normal(ks[0], (B, C, Himg, Wimg), jnp.float32)
    captions = jax.random.randint(ks[1], (B, seq_len), 0, V, dtype=jnp.int32)

    # PyTorch nn.LSTM has two biases (b_ih, b_hh); the kernel consumes their sum.
    b_ih = jax.random.normal(ks[8], (1, 4 * Hdim), jnp.float32) * 0.1
    b_hh = jax.random.normal(ks[9], (1, 4 * Hdim), jnp.float32) * 0.1

    params = {
        "w_conv": jax.random.normal(ks[2], (C, F), jnp.float32) * 0.1,
        "b_conv": jnp.zeros((1, F), jnp.float32),
        "w_fc":   jax.random.normal(ks[3], (F, E), jnp.float32) * 0.1,
        "b_fc":   jnp.zeros((1, E), jnp.float32),
        "emb":    jax.random.normal(ks[4], (V, E), jnp.float32) * 0.1,
        "w_ih":   jax.random.normal(ks[5], (E, 4 * Hdim), jnp.float32) * 0.1,
        "w_hh":   jax.random.normal(ks[6], (Hdim, 4 * Hdim), jnp.float32) * 0.1,
        "b_lstm": b_ih + b_hh,
        "w_dec":  jax.random.normal(ks[7], (Hdim, V), jnp.float32) * 0.1,
        "b_dec":  jnp.zeros((1, V), jnp.float32),
    }

    logits = forward_train(params, imgs, captions, lengths)
    jax.block_until_ready(logits)
    assert logits.shape == (sum(lengths), V), logits.shape
    print("KERNEL_OK")
</pallas_src>

<mosaic_0001>
module attributes {stable_mosaic.version = 11 : i64} {
  func.func @_cnn_embed_kernel(%arg0: i32, %arg1: i32, %arg2: memref<2x3x256xf32, #tpu.memory_space<vmem>>, %arg3: memref<3x128xf32, #tpu.memory_space<vmem>>, %arg4: memref<1x128xf32, #tpu.memory_space<vmem>>, %arg5: memref<128x128xf32, #tpu.memory_space<vmem>>, %arg6: memref<1x128xf32, #tpu.memory_space<vmem>>, %arg7: memref<2x128xf32, #tpu.memory_space<vmem>>, %arg8: memref<2x3xf32, #tpu.memory_space<vmem>>) attributes {dimension_semantics = [#tpu.dimension_semantics<parallel>, #tpu.dimension_semantics<arbitrary>], iteration_bounds = array<i64: 1, 1>, scalar_prefetch = 0 : i64, scratch_operands = 1 : i64, tpu.core_type = #tpu.core_type<tc>, window_params = [{transform_indices = @transform_0, window_bounds = array<i64: 2, 3, 256>}, {pipeline_mode = #tpu.pipeline_mode<synchronous>, transform_indices = @transform_1, window_bounds = array<i64: 3, 128>}, {pipeline_mode = #tpu.pipeline_mode<synchronous>, transform_indices = @transform_2, window_bounds = array<i64: 1, 128>}, {pipeline_mode = #tpu.pipeline_mode<synchronous>, transform_indices = @transform_3, window_bounds = array<i64: 128, 128>}, {pipeline_mode = #tpu.pipeline_mode<synchronous>, transform_indices = @transform_4, window_bounds = array<i64: 1, 128>}, {transform_indices = @transform_5, window_bounds = array<i64: 2, 128>}]} {
    %c0_i32 = arith.constant 0 : i32
    %0 = arith.cmpi eq, %arg1, %c0_i32 : i32
    %1 = arith.extui %0 : i1 to i32
    %c0_i32_0 = arith.constant 0 : i32
    %2 = arith.cmpi ne, %1, %c0_i32_0 : i32
    scf.if %2 {
      %cst_9 = arith.constant 0.000000e+00 : f32
      %11 = vector.broadcast %cst_9 : f32 to vector<2x3xf32>
      %c0_10 = arith.constant 0 : index
      %c0_11 = arith.constant 0 : index
      %12 = vector.load %arg8[%c0_10, %c0_11] : memref<2x3xf32, #tpu.memory_space<vmem>>, vector<2x3xf32>
      tpu.vector_store %arg8[%c0_10, %c0_11], %11 {strides = array<i32>} : memref<2x3xf32, #tpu.memory_space<vmem>>, vector<2x3xf32>,
    } else {
    }
    %c0 = arith.constant 0 : index
    %c0_1 = arith.constant 0 : index
    %3 = vector.load %arg8[%c0, %c0_1] : memref<2x3xf32, #tpu.memory_space<vmem>>, vector<2x3xf32>
    %c0_2 = arith.constant 0 : index
    %c0_3 = arith.constant 0 : index
    %c0_4 = arith.constant 0 : index
    %4 = vector.load %arg2[%c0_2, %c0_3, %c0_4] : memref<2x3x256xf32, #tpu.memory_space<vmem>>, vector<2x3x256xf32>
    %cst = arith.constant dense<0.000000e+00> : vector<2x3xf32>
    %5 = vector.multi_reduction <add>, %4, %cst [2] : vector<2x3x256xf32> to vector<2x3xf32>
    %6 = arith.addf %3, %5 : vector<2x3xf32>
    %c0_5 = arith.constant 0 : index
    %c0_6 = arith.constant 0 : index
    %7 = vector.load %arg8[%c0_5, %c0_6] : memref<2x3xf32, #tpu.memory_space<vmem>>, vector<2x3xf32>
    tpu.vector_store %arg8[%c0_5, %c0_6], %6 {strides = array<i32>} : memref<2x3xf32, #tpu.memory_space<vmem>>, vector<2x3xf32>,
    %c0_i32_7 = arith.constant 0 : i32
    %8 = arith.cmpi eq, %arg1, %c0_i32_7 : i32
    %9 = arith.extui %8 : i1 to i32
    %c0_i32_8 = arith.constant 0 : i32
    %10 = arith.cmpi ne, %9, %c0_i32_8 : i32
    scf.if %10 {
      %c0_9 = arith.constant 0 : index
      %c0_10 = arith.constant 0 : index
      %11 = vector.load %arg8[%c0_9, %c0_10] : memref<2x3xf32, #tpu.memory_space<vmem>>, vector<2x3xf32>
      %cst_11 = arith.constant 3.906250e-03 : f32
      %12 = vector.broadcast %cst_11 : f32 to vector<2x3xf32>
      %13 = arith.mulf %11, %12 : vector<2x3xf32>
      %c0_12 = arith.constant 0 : index
      %c0_13 = arith.constant 0 : index
      %14 = vector.load %arg3[%c0_12, %c0_13] : memref<3x128xf32, #tpu.memory_space<vmem>>, vector<3x128xf32>
      %cst_14 = arith.constant dense<0.000000e+00> : vector<2x128xf32>
      %15 = tpu.matmul %13, %14, %cst_14 {dimension_numbers = #tpu.dot_dimension_numbers<[1], [0], [0], [1], [0, 0, 1, 1], [], []>} : vector<2x3xf32>, vector<3x128xf32>, vector<2x128xf32> -> vector<2x128xf32>
      %c0_15 = arith.constant 0 : index
      %c0_16 = arith.constant 0 : index
      %16 = vector.load %arg4[%c0_15, %c0_16] : memref<1x128xf32, #tpu.memory_space<vmem>>, vector<1x128xf32>
      %17 = vector.broadcast %16 : vector<1x128xf32> to vector<2x128xf32>
      %18 = arith.addf %15, %17 : vector<2x128xf32>
      %c0_17 = arith.constant 0 : index
      %c0_18 = arith.constant 0 : index
      %19 = vector.load %arg5[%c0_17, %c0_18] : memref<128x128xf32, #tpu.memory_space<vmem>>, vector<128x128xf32>
      %cst_19 = arith.constant dense<0.000000e+00> : vector<2x128xf32>
      %20 = tpu.matmul %18, %19, %cst_19 {dimension_numbers = #tpu.dot_dimension_numbers<[1], [0], [0], [1], [0, 0, 1, 1], [], []>} : vector<2x128xf32>, vector<128x128xf32>, vector<2x128xf32> -> vector<2x128xf32>
      %c0_20 = arith.constant 0 : index
      %c0_21 = arith.constant 0 : index
      %21 = vector.load %arg6[%c0_20, %c0_21] : memref<1x128xf32, #tpu.memory_space<vmem>>, vector<1x128xf32>
      %22 = vector.broadcast %21 : vector<1x128xf32> to vector<2x128xf32>
      %23 = arith.addf %20, %22 : vector<2x128xf32>
      %c0_22 = arith.constant 0 : index
      %c0_23 = arith.constant 0 : index
      %24 = vector.load %arg7[%c0_22, %c0_23] : memref<2x128xf32, #tpu.memory_space<vmem>>, vector<2x128xf32>
      tpu.vector_store %arg7[%c0_22, %c0_23], %23 {strides = array<i32>} : memref<2x128xf32, #tpu.memory_space<vmem>>, vector<2x128xf32>,
    } else {
    }
    return
  }
  func.func @transform_0(%arg0: i32, %arg1: i32) -> (i32, i32, i32) {
    %c0_i32 = arith.constant 0 : i32
    %c0_i32_0 = arith.constant 0 : i32
    return %arg0, %c0_i32, %arg1 : i32, i32, i32
  }
  func.func @transform_1(%arg0: i32, %arg1: i32) -> (i32, i32) {
    %c0_i32 = arith.constant 0 : i32
    %c0_i32_0 = arith.constant 0 : i32
    %c0_i32_1 = arith.constant 0 : i32
    return %c0_i32, %c0_i32_0 : i32, i32
  }
  func.func @transform_2(%arg0: i32, %arg1: i32) -> (i32, i32) {
    %c0_i32 = arith.constant 0 : i32
    %c0_i32_0 = arith.constant 0 : i32
    %c0_i32_1 = arith.constant 0 : i32
    return %c0_i32, %c0_i32_0 : i32, i32
  }
  func.func @transform_3(%arg0: i32, %arg1: i32) -> (i32, i32) {
    %c0_i32 = arith.constant 0 : i32
    %c0_i32_0 = arith.constant 0 : i32
    %c0_i32_1 = arith.constant 0 : i32
    return %c0_i32, %c0_i32_0 : i32, i32
  }
  func.func @transform_4(%arg0: i32, %arg1: i32) -> (i32, i32) {
    %c0_i32 = arith.constant 0 : i32
    %c0_i32_0 = arith.constant 0 : i32
    %c0_i32_1 = arith.constant 0 : i32
    return %c0_i32, %c0_i32_0 : i32, i32
  }
  func.func @transform_5(%arg0: i32, %arg1: i32) -> (i32, i32) {
    %c0_i32 = arith.constant 0 : i32
    %c0_i32_0 = arith.constant 0 : i32
    return %arg0, %c0_i32 : i32, i32
  }
}

</mosaic_0001>

<bundles_post_ra>
// kernel: tpu_custom_call.1
= control target key start
LH: loop header
LB: loop body
LE: loop exit
PB: predicated region body
PF: predicated region fallthrough
CT: control target
= control target key end

     0   :  { %10 = vsyncpa [#allocation4], 0  ;;  %s477_s0 = inlined_call_operand.vmem [shape: f32[2,3,256], index: 0, kind: input, shape index: {}]   ;;  %s478_s1 = inlined_call_operand.vmem [shape: f32[3,128], index: 1, kind: input, shape index: {}]   ;;  %s479_s2 = inlined_call_operand.vmem [shape: f32[1,128], index: 2, kind: input, shape index: {}]   ;;  %s480_s3 = inlined_call_operand.hbm [shape: f32[128,128], index: 3, kind: input, shape index: {}]   ;;  %s481_s4 = inlined_call_operand.vmem [shape: f32[1,128], index: 4, kind: input, shape index: {}]   ;;  %s482_s5 = inlined_call_operand.hbm [shape: f32[2,128], index: 5, kind: output, shape index: {}]  }
   0x1   :  { %11 = vsyncpa [#allocation5], 0  ;;  %s393_s18 = smov [#allocation3]  }
   0x2   :  { %s23_s19 = sshll.u32 %s393_s18, 4  ;;  %s24_s19 = int_to_ptr.vmem [resolvable:$true] %s23_s19 }
   0x3   :  { %s357_s20 = scalar_lea.vmem %s24_s19, 2048  ;;  %p362_p1 = scmp.lt.s32.totalorder %s24_s19, %s24_s19 }
   0x4   :  { %p358_p0 = scmp.ne.s32.totalorder %s24_s19, %s357_s20  ;;  %p363_p2 = scmp.lt.s32.totalorder %s357_s20, %s357_s20 }
   0x6   :  { %p364_p3 = por %p363_p2, %p362_p1 }
   0x8   :  { %p365_p4 = pnand %p364_p3, %p358_p0 }
   0xa   :  { %368 = shalt.err (!%p365_p4)
}
   0xb   :  { %s394_s21 = smov 128   ;;  %s395_s22 = smov 8  }
   0xc   :  { %29 = dma.hbm_to_vmem [thread:$0]  %s480_s3, 2048, %s24_s19, [#allocation4], %s394_s21, %s394_s21, %s395_s22  }
   0xd   :  { %389 = dma.done.wait [#allocation4], 2048  }
   0xe   :  { %390 = vsyncadd [#allocation4], 4294965248  ;;  %vm50_vm0 = vcmask 1042432   ;;  %v42_v0 = vld [vmem:[%s477_s0] sm:$0x77]  ;;  %vm39_vm1 = vcmask 17408   ;;  %v63_v26 = vlaneseq }
   0xf   :  { %v43_v1 = vld [vmem:[%s477_s0 + $0x8] sm:$0x77]  ;;  %v46_v2 = vcombine.high %v42_v0, %v42_v0  ;;  %v51_v3 = vsel %vm50_vm0, %v42_v0, 0.0  ;;  %v396_v10 = vmov 0.0   ;;  %v84_v11 = vld [vmem:[%s478_s1] sm:$0x7] }
  0x10   :  { %v47_v4 = vcombine.high %v43_v1, %v43_v1  ;;  %v56_v6 = vsel %vm50_vm0, %v43_v1, 0.0  ;;  %40 = vst.msk [vmem:[#allocation2] sm:$0x3] %vm39_vm1, %v396_v10  ;;  %301 = vmatprep.subr.mxu0 %v396_v10  ;;  %306 = vmatprep.subr.mxu1 %v396_v10  ;;  %vm397_vm2 = vmmov 0   ;;  %v184_v12 = vld [vmem:[#allocation3 + $0x78] sm:$0xff]  ;;  %v183_v13 = vld [vmem:[#allocation3 + $0x70] sm:$0xff] }
  0x11   :  { %v52_v5 = vsel %vm50_vm0, %v46_v2, 0.0  ;;  %302 = vmatpush3.msk.msra.mxu0 %vm50_vm0, %v84_v11  ;;  %303 = vmatprep.mubr.msk.f32.mxu0 %vm397_vm2, %v396_v10  ;;  %v182_v14 = vld [vmem:[#allocation3 + $0x68] sm:$0xff]  ;;  %v181_v15 = vld [vmem:[#allocation3 + $0x60] sm:$0xff]  ;;  %v180_v16 = vld [vmem:[#allocation3 + $0x58] sm:$0xff]  ;;  %v64_v27 = vand.u32 127, %v63_v26  ;;  %v66_v28 = vshrl.u32 %v63_v26, 7 }
  0x12   :  { %v57_v7 = vsel %vm50_vm0, %v47_v4, 0.0  ;;  %v53_v8 = vadd.f32 %v52_v5, %v51_v3  ;;  %338 = vmatprep.mubr.msk.f32.mxu1 %vm397_vm2, %v396_v10  ;;  %307 = vmatpush3.msra.mxu1 %v184_v12  ;;  %v179_v17 = vld [vmem:[#allocation3 + $0x50] sm:$0xff]  ;;  %v178_v18 = vld [vmem:[#allocation3 + $0x48] sm:$0xff]  ;;  %v177_v19 = vld [vmem:[#allocation3 + $0x40] sm:$0xff]  ;;  %vm73_vm3 = vcmask 1041409   ;;  %vm92_vm4 = vcmask 23552  }
  0x13   :  { %v58_v9 = vadd.f32 %v57_v7, %v56_v6  ;;  %308 = vmatprep.subr.mxu1 %v396_v10  ;;  %v176_v20 = vld [vmem:[#allocation3 + $0x38] sm:$0xff]  ;;  %v175_v21 = vld [vmem:[#allocation3 + $0x30] sm:$0xff]  ;;  %v174_v22 = vld [vmem:[#allocation3 + $0x28] sm:$0xff]  ;;  %v67_v30 = vsub.s32 %v64_v27, %v66_v28  ;;  %s398_s7 = smov [#allocation6]  }
  0x14   :  { %54 = vadd.xlane.f32.xlu0 %v53_v8  ;;  %309 = vmatpush3.msra.mxu1 %v183_v13  ;;  %v173_v23 = vld [vmem:[#allocation3 + $0x20] sm:$0xff]  ;;  %v172_v24 = vld [vmem:[#allocation3 + $0x18] sm:$0xff]  ;;  %v171_v25 = vld [vmem:[#allocation3 + $0x10] sm:$0xff]  ;;  %s269_s8 = sshll.u32 %s398_s7, 4  ;;  %s270_s8 = int_to_ptr.vmem [resolvable:$true] %s269_s8 }
  0x15   :  { %310 = vmatprep.subr.mxu1 %v396_v10  ;;  %v170_v39 = vld [vmem:[#allocation3 + $0x8] sm:$0xff]  ;;  %v169_v40 = vld [vmem:[#allocation3] sm:$0xff]  ;;  %v278_v41 = vld [vmem:[%s479_s2] ss:$0 sm:$0xff]  ;;  %s369_s9 = scalar_lea.vmem %s270_s8, 32  ;;  %p374_p6 = scmp.lt.s32.totalorder %s270_s8, %s270_s8 }
  0x16   :  { %311 = vmatpush3.msra.mxu1 %v182_v14  ;;  %v281_v45 = vld [vmem:[%s481_s4] ss:$0 sm:$0xff]  ;;  %p370_p5 = scmp.ne.s32.totalorder %s270_s8, %s369_s9  ;;  %p375_p7 = scmp.lt.s32.totalorder %s369_s9, %s369_s9 }
  0x17   :  { %312 = vmatprep.subr.mxu1 %v396_v10  ;;  %v41_v33 = vld [vmem:[#allocation2] sm:$0x3] }
  0x18   :  { %59 = vadd.xlane.f32.xlu0 %v58_v9  ;;  %313 = vmatpush3.msra.mxu1 %v181_v15  ;;  %p376_p8 = por %p375_p7, %p374_p6 }
  0x19   :  { %314 = vmatprep.subr.mxu1 %v396_v10 }
  0x1a   :  { %315 = vmatpush3.msra.mxu1 %v180_v16  ;;  %p377_p9 = pnand %p376_p8, %p370_p5 }
  0x1b   :  { %316 = vmatprep.subr.mxu1 %v396_v10 }
  0x1c   :  { %317 = vmatpush3.msra.mxu1 %v179_v17 }
  0x1d   :  { %318 = vmatprep.subr.mxu1 %v396_v10 }
  0x1e   :  { %319 = vmatpush3.msra.mxu1 %v178_v18 }
  0x1f   :  { %320 = vmatprep.subr.mxu1 %v396_v10 }
  0x20   :  { %321 = vmatpush3.msra.mxu1 %v177_v19 }
  0x21   :  { %322 = vmatprep.subr.mxu1 %v396_v10 }
  0x22   :  { %323 = vmatpush3.msra.mxu1 %v176_v20 }
  0x23   :  { %324 = vmatprep.subr.mxu1 %v396_v10 }
  0x24   :  { %325 = vmatpush3.msra.mxu1 %v175_v21 }
  0x25   :  { %326 = vmatprep.subr.mxu1 %v396_v10 }
  0x26   :  { %327 = vmatpush3.msra.mxu1 %v174_v22 }
  0x27   :  { %328 = vmatprep.subr.mxu1 %v396_v10 }
  0x28   :  { %329 = vmatpush3.msra.mxu1 %v173_v23 }
  0x29   :  { %330 = vmatprep.subr.mxu1 %v396_v10 }
  0x2a   :  { %331 = vmatpush3.msra.mxu1 %v172_v24 }
  0x2b   :  { %332 = vmatprep.subr.mxu1 %v396_v10 }
  0x2c   :  { %333 = vmatpush3.msra.mxu1 %v171_v25 }
  0x2d   :  { %334 = vmatprep.subr.mxu1 %v396_v10 }
  0x2e   :  { %335 = vmatpush3.msra.mxu1 %v170_v39 }
  0x2f   :  { %336 = vmatprep.subr.mxu1 %v396_v10 }
  0x30   :  { %337 = vmatpush3.msra.mxu1 %v169_v40 }
  0x9d   :  { %v55_v29 = vpop.xlane.xlu0 %54 }
  0x9e   :  { %v68_v32 = vrot.slane %v55_v29, %v67_v30 }
  0xa1   :  { %v60_v31 = vpop.xlane.xlu0 %59 }
  0xa2   :  { %v72_v34 = vrot.slane %v60_v31, %v67_v30 }
  0xa4   :  { %v74_v35 = vsel %vm73_vm3, %v72_v34, %v68_v32 }
  0xa5   :  { %v76_v36 = vadd.f32 %v74_v35, %v41_v33 }
  0xa7   :  { %78 = vst.msk [vmem:[#allocation2] sm:$0x3] %vm39_vm1, %v76_v36 }
  0xae   :  { %v82_v37 = vld [vmem:[#allocation2] sm:$0x3] }
  0xaf   :  { %v83_v38 = vmul.f32 0.00390625, %v82_v37 }
  0xb1   :  { %304 = vmatmul.mubr.msk.f32.vlgmr.msra.gmra.mxu0 %vm92_vm4, %v83_v38 }
 0x171   :  { %v165_v42 = vpop.f32.mrf.mxu0 }
 0x172   :  { %v166_v43 = vadd.f32 %v278_v41, %v165_v42 }
 0x173   :  { %v305_v44 = vpop.f32.mrf.mxu0 }
 0x174   :  { %339 = vmatmul.mubr.f32.vlgmr.msra.gmra.mxu1 %v166_v43 }
 0x234   :  { %v258_v46 = vpop.f32.mrf.mxu1 }
 0x235   :  { %v259_v47 = vadd.f32 %v281_v45, %v258_v46 }
 0x236   :  { %v340_v48 = vpop.f32.mrf.mxu1 }
 0x237   :  { %262 = vst [vmem:[#allocation6] sm:$0x3] %v259_v47 }
 0x238   :  { %380 = shalt.err (!%p377_p9)
}
 0x239   :  { %272 = dma.vmem_to_hbm [thread:$0]  %s270_s8, 32, %s482_s5, [#allocation5]  }
 0x23a   :  { %391 = dma.done.wait [#allocation5], 32  }
 0x23b   :  { %392 = vsyncadd [#allocation5], 4294967264 }
 0x23c   :  { %276 = vsyncpa [#allocation4], 1 }
 0x23d   :  { %277 = vsyncpa [#allocation5], 1 }

</bundles_post_ra>
